<compile_context>
chip_gen: v7x
topology: tpu7x:2x2x1
jax: 0.10.0
libtpu: 0.0.40
codegen_flags: <defaults>
</compile_context>

<pallas_src>
import functools
import math

import jax
import jax.numpy as jnp
from jax.experimental import pallas as pl
from jax.experimental.pallas import tpu as pltpu


def _attn_kernel(x_ref, a_ref, at_ref, w1_ref, b1_ref, w2_ref, b2_ref, o_ref,
                 *, n_patches):
    # x_ref : (M=bt*N, F) f32  -- bt bags of N patches (rows flattened)
    # a_ref : (bt, M) bf16     -- block-diagonal bag selector (exact 0/1)
    # at_ref: (M, bt) bf16     -- its transpose
    # w1_ref: (F, H) bf16 ; b1_ref: (1, H) f32
    # w2_ref: (1, H) f32 (row layout) ; b2_ref: (1, 1) f32
    # o_ref : (M, 1) f32       -- attention weights
    x = x_ref[...]

    # Zero-patch mask from the ORIGINAL f32 values (bf16-safe semantics).
    mask = jnp.sum(jnp.abs(x), axis=-1, keepdims=True) > 0.0            # (M, 1)

    # Linear(F->H) on the MXU (bf16 inputs, f32 accumulation) + tanh.
    h = jnp.dot(x.astype(jnp.bfloat16), w1_ref[...],
                preferred_element_type=jnp.float32) + b1_ref[...]       # (M, H)
    t = jnp.tanh(h)

    # Linear(H->1) as a VPU multiply + lane reduction (b2 kept for parity).
    s = jnp.sum(t * w2_ref[...], axis=-1, keepdims=True) + b2_ref[...]  # (M, 1)

    # scores*mask - 1e10*(1-mask)  ==  where(mask, scores, -1e10)
    s = jnp.where(mask, s, -1e10)

    # Per-bag softmax over the patch axis, vectorized over all bags in the
    # block: shift by the block-global max (per-bag shift invariance makes
    # this exactly equivalent), exponentiate (masked rows -> exactly 0), then
    # per-bag denominators as segment sums on the MXU.
    gmax = jnp.max(s, axis=0, keepdims=True)                            # (1, 1)
    e = jnp.exp(s - gmax)                                               # (M, 1)

    # Two-term bf16 split keeps ~f32 accuracy through the bf16 MXU.
    e_hi = e.astype(jnp.bfloat16)
    e_lo = (e - e_hi.astype(jnp.float32)).astype(jnp.bfloat16)
    d = (jnp.dot(a_ref[...], e_hi, preferred_element_type=jnp.float32)
         + jnp.dot(a_ref[...], e_lo, preferred_element_type=jnp.float32))   # (bt, 1)

    d_hi = d.astype(jnp.bfloat16)
    d_lo = (d - d_hi.astype(jnp.float32)).astype(jnp.bfloat16)
    denom = (jnp.dot(at_ref[...], d_hi, preferred_element_type=jnp.float32)
             + jnp.dot(at_ref[...], d_lo, preferred_element_type=jnp.float32))  # (M, 1)

    # Bags whose patches are all masked: softmax of an all -1e10 row is
    # uniform (matches the reference exactly).
    all_masked = denom <= 0.0
    num = jnp.where(all_masked, 1.0, e)
    den = jnp.where(all_masked, float(n_patches), denom)
    o_ref[...] = (num / den).astype(o_ref.dtype)


def _choose_block_batches(B, N, F, H, block_b=None,
                          vmem_budget_bytes=20 * 1024 * 1024):
    """Bags per grid step.  bt*N must be a multiple of 8 (sublane rule for the
    (bt*N, F) x block); the resident selector matrices scale as bt^2*N, so
    they get their own cap."""
    m = 8 // math.gcd(N, 8)
    max_bt = ((B + m - 1) // m) * m
    if block_b is not None:
        bt = max(m, (int(block_b) // m) * m)
        return min(bt, max_bt)
    per_row = 20 * F + 8 * H + 1536        # rough VMEM bytes per patch row
    bt = max(1, (vmem_budget_bytes // per_row) // N)
    bt = max(m, (bt // m) * m)
    sel_cap = max(m, (int((524288 // N) ** 0.5) // m) * m)
    bt = min(bt, sel_cap, max_bt)
    # Prefer a divisor of B: avoids padding the batch (an extra copy of x).
    for cand in range(bt, m - 1, -m):
        if B % cand == 0:
            if 4 * cand >= bt:
                return cand
            break
    return bt


def efficient_patch_attention(x, w1, b1, w2, b2, *, block_b=None):
    """x: [B, N, F] float32.  Weights stored so the projection is `x @ W + b`
    (i.e. W is the transpose of torch's nn.Linear.weight).
    Returns attention weights [B, N, 1] float32."""
    B, N, F = x.shape
    H = w1.shape[1]
    assert w1.shape == (F, H) and b1.shape == (1, H)
    assert w2.shape == (H, 1) and b2.shape == (1, 1)

    bt = _choose_block_batches(B, N, F, H, block_b)
    b_pad = pl.cdiv(B, bt) * bt
    mt = bt * N

    # Single HBM pass over x: flatten (free, row-major).  Mask and bf16 cast
    # both happen inside the kernel.
    x2 = x.reshape(B * N, F)
    if b_pad != B:
        # Padded bags are all-zero -> fully masked -> uniform weights, sliced off.
        x2 = jnp.pad(x2, ((0, (b_pad - B) * N), (0, 0)))

    # Block-diagonal bag selector for per-bag segment sums on the MXU
    # (entries are exactly 0/1, so bfloat16 storage is exact).
    seg = jnp.arange(mt, dtype=jnp.int32) // N
    a_sel = (seg[None, :] == jnp.arange(bt, dtype=jnp.int32)[:, None]
             ).astype(jnp.bfloat16)                                   # (bt, mt)
    a_selt = a_sel.T                                                   # (mt, bt)

    w1b = w1.astype(jnp.bfloat16)
    b1f = b1.astype(jnp.float32)
    w2row = w2.reshape(1, H).astype(jnp.float32)
    b2f = b2.astype(jnp.float32)

    out = pl.pallas_call(
        functools.partial(_attn_kernel, n_patches=N),
        out_shape=jax.ShapeDtypeStruct((b_pad * N, 1), jnp.float32),
        grid_spec=pltpu.PrefetchScalarGridSpec(
            num_scalar_prefetch=0,
            grid=(b_pad // bt,),
            in_specs=[
                pl.BlockSpec((mt, F), lambda i: (i, 0)),    # x rows (f32, streamed)
                pl.BlockSpec((bt, mt), lambda i: (0, 0)),   # selector   (resident)
                pl.BlockSpec((mt, bt), lambda i: (0, 0)),   # selector^T (resident)
                pl.BlockSpec((F, H), lambda i: (0, 0)),     # W1 bf16    (resident)
                pl.BlockSpec((1, H), lambda i: (0, 0)),     # b1
                pl.BlockSpec((1, H), lambda i: (0, 0)),     # w2 row
                pl.BlockSpec((1, 1), lambda i: (0, 0)),     # b2
            ],
            out_specs=pl.BlockSpec((mt, 1), lambda i: (i, 0)),
        ),
        compiler_params=pltpu.CompilerParams(
            dimension_semantics=("parallel",),
            vmem_limit_bytes=40 * 1024 * 1024,
        ),
    )(x2, a_sel, a_selt, w1b, b1f, w2row, b2f)

    return out.reshape(b_pad, N, 1)[:B]


def _reference_f32(x, w1, b1, w2, b2):
    scores = jnp.tanh(x @ w1 + b1) @ w2 + b2                           # [B, N, 1]
    mask = (jnp.sum(jnp.abs(x), axis=2, keepdims=True) > 0).astype(jnp.float32)
    scores = scores * mask - 1e10 * (1.0 - mask)
    return jax.nn.softmax(scores, axis=1)


def _reference_bf16_inputs(x, w1, b1, w2, b2):
    # Same math, with x/W1 rounded to bf16 like the kernel's MXU inputs
    # (mask still computed from f32 x, as in the kernel).
    xb = x.astype(jnp.bfloat16).astype(jnp.float32)
    w1b = w1.astype(jnp.bfloat16).astype(jnp.float32)
    scores = jnp.tanh(xb @ w1b + b1) @ w2 + b2
    mask = (jnp.sum(jnp.abs(x), axis=2, keepdims=True) > 0).astype(jnp.float32)
    scores = scores * mask - 1e10 * (1.0 - mask)
    return jax.nn.softmax(scores, axis=1)


if __name__ == "__main__":
    def make_inputs(key, B, N, F, H):
        kx, k1, k2, k3, k4 = jax.random.split(key, 5)
        x = jax.random.normal(kx, (B, N, F), dtype=jnp.float32)
        x = x.at[0, -1, :].set(0.0)      # a single zero patch (mask path)
        lim1, lim2 = 1.0 / F ** 0.5, 1.0 / H ** 0.5
        w1 = jax.random.uniform(k1, (F, H), jnp.float32, -lim1, lim1)
        b1 = jax.random.uniform(k2, (1, H), jnp.float32, -lim1, lim1)
        w2 = jax.random.uniform(k3, (H, 1), jnp.float32, -lim2, lim2)
        b2 = jax.random.uniform(k4, (1, 1), jnp.float32, -lim2, lim2)
        return x, w1, b1, w2, b2

    def check(out, x, w1, b1, w2, b2):
        assert out.shape == (x.shape[0], x.shape[1], 1)
        assert bool(jnp.all(jnp.isfinite(out)))
        assert jnp.allclose(out, _reference_bf16_inputs(x, w1, b1, w2, b2),
                            atol=1e-3, rtol=1e-3), "mismatch vs bf16-input reference"
        assert jnp.allclose(out, _reference_f32(x, w1, b1, w2, b2),
                            atol=2e-2, rtol=2e-2), "mismatch vs f32 reference"
        assert jnp.allclose(jnp.sum(out, axis=1), 1.0, atol=1e-4)

    key = jax.random.PRNGKey(0)
    k_a, k_b, k_c = jax.random.split(key, 3)

    # Case 1: small shapes consistent with the module (single grid step).
    B, N, F, H = 2, 8, 16, 32
    x, w1, b1, w2, b2 = make_inputs(k_a, B, N, F, H)
    out = jax.block_until_ready(efficient_patch_attention(x, w1, b1, w2, b2))
    check(out, x, w1, b1, w2, b2)

    # Case 2: multi-step grid with batch padding (B % block_b != 0) and a bag
    # whose patches are all zero (fully masked -> uniform weights path).
    B, N, F, H = 5, 24, 64, 32
    x, w1, b1, w2, b2 = make_inputs(k_b, B, N, F, H)
    x = x.at[2].set(0.0)
    out = jax.block_until_ready(
        efficient_patch_attention(x, w1, b1, w2, b2, block_b=2))
    check(out, x, w1, b1, w2, b2)

    # Case 3: n_patches not a multiple of 8 (handled by block-batch alignment).
    B, N, F, H = 3, 10, 32, 32
    x, w1, b1, w2, b2 = make_inputs(k_c, B, N, F, H)
    out = jax.block_until_ready(efficient_patch_attention(x, w1, b1, w2, b2))
    check(out, x, w1, b1, w2, b2)

    print("KERNEL_OK")
</pallas_src>

<mosaic_0001>
module attributes {stable_mosaic.version = 11 : i64} {
  func.func @_attn_kernel(%arg0: i32, %arg1: memref<16x16xf32, #tpu.memory_space<vmem>>, %arg2: memref<2x16xbf16, #tpu.memory_space<vmem>>, %arg3: memref<16x2xbf16, #tpu.memory_space<vmem>>, %arg4: memref<16x32xbf16, #tpu.memory_space<vmem>>, %arg5: memref<1x32xf32, #tpu.memory_space<vmem>>, %arg6: memref<1x32xf32, #tpu.memory_space<vmem>>, %arg7: memref<1x1xf32, #tpu.memory_space<vmem>>, %arg8: memref<16x1xf32, #tpu.memory_space<vmem>>) attributes {dimension_semantics = [#tpu.dimension_semantics<parallel>], iteration_bounds = array<i64: 1>, scalar_prefetch = 0 : i64, scratch_operands = 0 : i64, tpu.core_type = #tpu.core_type<tc>, window_params = [{transform_indices = @transform_0, window_bounds = array<i64: 16, 16>}, {pipeline_mode = #tpu.pipeline_mode<synchronous>, transform_indices = @transform_1, window_bounds = array<i64: 2, 16>}, {pipeline_mode = #tpu.pipeline_mode<synchronous>, transform_indices = @transform_2, window_bounds = array<i64: 16, 2>}, {pipeline_mode = #tpu.pipeline_mode<synchronous>, transform_indices = @transform_3, window_bounds = array<i64: 16, 32>}, {pipeline_mode = #tpu.pipeline_mode<synchronous>, transform_indices = @transform_4, window_bounds = array<i64: 1, 32>}, {pipeline_mode = #tpu.pipeline_mode<synchronous>, transform_indices = @transform_5, window_bounds = array<i64: 1, 32>}, {pipeline_mode = #tpu.pipeline_mode<synchronous>, transform_indices = @transform_6, window_bounds = array<i64: 1, 1>}, {transform_indices = @transform_7, window_bounds = array<i64: 16, 1>}]} {
    %c0 = arith.constant 0 : index
    %c0_0 = arith.constant 0 : index
    %0 = vector.load %arg1[%c0, %c0_0] : memref<16x16xf32, #tpu.memory_space<vmem>>, vector<16x16xf32>
    %1 = math.absf %0 : vector<16x16xf32>
    %cst = arith.constant dense<0.000000e+00> : vector<16xf32>
    %2 = vector.multi_reduction <add>, %1, %cst [1] : vector<16x16xf32> to vector<16xf32>
    %3 = vector.shape_cast %2 : vector<16xf32> to vector<16x1xf32>
    %cst_1 = arith.constant 0.000000e+00 : f32
    %4 = vector.broadcast %cst_1 : f32 to vector<16x1xf32>
    %5 = arith.cmpf ogt, %3, %4 : vector<16x1xf32>
    %6 = arith.truncf %0 : vector<16x16xf32> to vector<16x16xbf16>
    %c0_2 = arith.constant 0 : index
    %c0_3 = arith.constant 0 : index
    %7 = vector.load %arg4[%c0_2, %c0_3] : memref<16x32xbf16, #tpu.memory_space<vmem>>, vector<16x32xbf16>
    %cst_4 = arith.constant dense<0.000000e+00> : vector<16x32xf32>
    %8 = tpu.matmul %6, %7, %cst_4 {dimension_numbers = #tpu.dot_dimension_numbers<[1], [0], [0], [1], [0, 0, 1, 1], [], []>} : vector<16x16xbf16>, vector<16x32xbf16>, vector<16x32xf32> -> vector<16x32xf32>
    %c0_5 = arith.constant 0 : index
    %c0_6 = arith.constant 0 : index
    %9 = vector.load %arg5[%c0_5, %c0_6] : memref<1x32xf32, #tpu.memory_space<vmem>>, vector<1x32xf32>
    %10 = vector.broadcast %9 : vector<1x32xf32> to vector<16x32xf32>
    %11 = arith.addf %8, %10 : vector<16x32xf32>
    %12 = math.tanh %11 : vector<16x32xf32>
    %c0_7 = arith.constant 0 : index
    %c0_8 = arith.constant 0 : index
    %13 = vector.load %arg6[%c0_7, %c0_8] : memref<1x32xf32, #tpu.memory_space<vmem>>, vector<1x32xf32>
    %14 = vector.broadcast %13 : vector<1x32xf32> to vector<16x32xf32>
    %15 = arith.mulf %12, %14 : vector<16x32xf32>
    %cst_9 = arith.constant dense<0.000000e+00> : vector<16xf32>
    %16 = vector.multi_reduction <add>, %15, %cst_9 [1] : vector<16x32xf32> to vector<16xf32>
    %17 = vector.shape_cast %16 : vector<16xf32> to vector<16x1xf32>
    %c0_10 = arith.constant 0 : index
    %c0_11 = arith.constant 0 : index
    %18 = vector.load %arg7[%c0_10, %c0_11] : memref<1x1xf32, #tpu.memory_space<vmem>>, vector<1x1xf32>
    %19 = vector.broadcast %18 : vector<1x1xf32> to vector<16x1xf32>
    %20 = arith.addf %17, %19 : vector<16x1xf32>
    %cst_12 = arith.constant -1.000000e+10 : f32
    %21 = vector.broadcast %cst_12 : f32 to vector<16x1xf32>
    %22 = arith.select %5, %20, %21 : vector<16x1xi1>, vector<16x1xf32>
    %cst_13 = arith.constant dense<0xFF800000> : vector<1xf32>
    %23 = vector.multi_reduction <maximumf>, %22, %cst_13 [0] : vector<16x1xf32> to vector<1xf32>
    %24 = vector.shape_cast %23 : vector<1xf32> to vector<1x1xf32>
    %25 = vector.broadcast %24 : vector<1x1xf32> to vector<16x1xf32>
    %26 = arith.subf %22, %25 : vector<16x1xf32>
    %27 = math.exp %26 : vector<16x1xf32>
    %28 = arith.truncf %27 : vector<16x1xf32> to vector<16x1xbf16>
    %29 = arith.extf %28 : vector<16x1xbf16> to vector<16x1xf32>
    %30 = arith.subf %27, %29 : vector<16x1xf32>
    %31 = arith.truncf %30 : vector<16x1xf32> to vector<16x1xbf16>
    %c0_14 = arith.constant 0 : index
    %c0_15 = arith.constant 0 : index
    %32 = vector.load %arg2[%c0_14, %c0_15] : memref<2x16xbf16, #tpu.memory_space<vmem>>, vector<2x16xbf16>
    %cst_16 = arith.constant dense<0.000000e+00> : vector<2x1xf32>
    %33 = tpu.matmul %32, %28, %cst_16 {dimension_numbers = #tpu.dot_dimension_numbers<[1], [0], [0], [1], [0, 0, 1, 1], [], []>} : vector<2x16xbf16>, vector<16x1xbf16>, vector<2x1xf32> -> vector<2x1xf32>
    %c0_17 = arith.constant 0 : index
    %c0_18 = arith.constant 0 : index
    %34 = vector.load %arg2[%c0_17, %c0_18] : memref<2x16xbf16, #tpu.memory_space<vmem>>, vector<2x16xbf16>
    %cst_19 = arith.constant dense<0.000000e+00> : vector<2x1xf32>
    %35 = tpu.matmul %34, %31, %cst_19 {dimension_numbers = #tpu.dot_dimension_numbers<[1], [0], [0], [1], [0, 0, 1, 1], [], []>} : vector<2x16xbf16>, vector<16x1xbf16>, vector<2x1xf32> -> vector<2x1xf32>
    %36 = arith.addf %33, %35 : vector<2x1xf32>
    %37 = arith.truncf %36 : vector<2x1xf32> to vector<2x1xbf16>
    %38 = arith.extf %37 : vector<2x1xbf16> to vector<2x1xf32>
    %39 = arith.subf %36, %38 : vector<2x1xf32>
    %40 = arith.truncf %39 : vector<2x1xf32> to vector<2x1xbf16>
    %c0_20 = arith.constant 0 : index
    %c0_21 = arith.constant 0 : index
    %41 = vector.load %arg3[%c0_20, %c0_21] : memref<16x2xbf16, #tpu.memory_space<vmem>>, vector<16x2xbf16>
    %cst_22 = arith.constant dense<0.000000e+00> : vector<16x1xf32>
    %42 = tpu.matmul %41, %37, %cst_22 {dimension_numbers = #tpu.dot_dimension_numbers<[1], [0], [0], [1], [0, 0, 1, 1], [], []>} : vector<16x2xbf16>, vector<2x1xbf16>, vector<16x1xf32> -> vector<16x1xf32>
    %c0_23 = arith.constant 0 : index
    %c0_24 = arith.constant 0 : index
    %43 = vector.load %arg3[%c0_23, %c0_24] : memref<16x2xbf16, #tpu.memory_space<vmem>>, vector<16x2xbf16>
    %cst_25 = arith.constant dense<0.000000e+00> : vector<16x1xf32>
    %44 = tpu.matmul %43, %40, %cst_25 {dimension_numbers = #tpu.dot_dimension_numbers<[1], [0], [0], [1], [0, 0, 1, 1], [], []>} : vector<16x2xbf16>, vector<2x1xbf16>, vector<16x1xf32> -> vector<16x1xf32>
    %45 = arith.addf %42, %44 : vector<16x1xf32>
    %cst_26 = arith.constant 0.000000e+00 : f32
    %46 = vector.broadcast %cst_26 : f32 to vector<16x1xf32>
    %47 = arith.cmpf ole, %45, %46 : vector<16x1xf32>
    %cst_27 = arith.constant 1.000000e+00 : f32
    %48 = vector.broadcast %cst_27 : f32 to vector<16x1xf32>
    %49 = arith.select %47, %48, %27 : vector<16x1xi1>, vector<16x1xf32>
    %cst_28 = arith.constant 8.000000e+00 : f32
    %50 = vector.broadcast %cst_28 : f32 to vector<16x1xf32>
    %51 = arith.select %47, %50, %45 : vector<16x1xi1>, vector<16x1xf32>
    %52 = arith.divf %49, %51 : vector<16x1xf32>
    %c0_29 = arith.constant 0 : index
    %c0_30 = arith.constant 0 : index
    %53 = vector.load %arg8[%c0_29, %c0_30] : memref<16x1xf32, #tpu.memory_space<vmem>>, vector<16x1xf32>
    tpu.vector_store %arg8[%c0_29, %c0_30], %52 {strides = array<i32>} : memref<16x1xf32, #tpu.memory_space<vmem>>, vector<16x1xf32>,
    return
  }
  func.func @transform_0(%arg0: i32) -> (i32, i32) {
    %c0_i32 = arith.constant 0 : i32
    %c0_i32_0 = arith.constant 0 : i32
    return %arg0, %c0_i32 : i32, i32
  }
  func.func @transform_1(%arg0: i32) -> (i32, i32) {
    %c0_i32 = arith.constant 0 : i32
    %c0_i32_0 = arith.constant 0 : i32
    %c0_i32_1 = arith.constant 0 : i32
    return %c0_i32, %c0_i32_0 : i32, i32
  }
  func.func @transform_2(%arg0: i32) -> (i32, i32) {
    %c0_i32 = arith.constant 0 : i32
    %c0_i32_0 = arith.constant 0 : i32
    %c0_i32_1 = arith.constant 0 : i32
    return %c0_i32, %c0_i32_0 : i32, i32
  }
  func.func @transform_3(%arg0: i32) -> (i32, i32) {
    %c0_i32 = arith.constant 0 : i32
    %c0_i32_0 = arith.constant 0 : i32
    %c0_i32_1 = arith.constant 0 : i32
    return %c0_i32, %c0_i32_0 : i32, i32
  }
  func.func @transform_4(%arg0: i32) -> (i32, i32) {
    %c0_i32 = arith.constant 0 : i32
    %c0_i32_0 = arith.constant 0 : i32
    %c0_i32_1 = arith.constant 0 : i32
    return %c0_i32, %c0_i32_0 : i32, i32
  }
  func.func @transform_5(%arg0: i32) -> (i32, i32) {
    %c0_i32 = arith.constant 0 : i32
    %c0_i32_0 = arith.constant 0 : i32
    %c0_i32_1 = arith.constant 0 : i32
    return %c0_i32, %c0_i32_0 : i32, i32
  }
  func.func @transform_6(%arg0: i32) -> (i32, i32) {
    %c0_i32 = arith.constant 0 : i32
    %c0_i32_0 = arith.constant 0 : i32
    %c0_i32_1 = arith.constant 0 : i32
    return %c0_i32, %c0_i32_0 : i32, i32
  }
  func.func @transform_7(%arg0: i32) -> (i32, i32) {
    %c0_i32 = arith.constant 0 : i32
    %c0_i32_0 = arith.constant 0 : i32
    return %arg0, %c0_i32 : i32, i32
  }
}

</mosaic_0001>

<bundles_post_ra>
// kernel: tpu_custom_call.1
= control target key start
LH: loop header
LB: loop body
LE: loop exit
PB: predicated region body
PF: predicated region fallthrough
CT: control target
= control target key end

     0   :  { %s578_s0 = inlined_call_operand.hbm [shape: f32[16,16], index: 0, kind: input, shape index: {}]   ;;  %s579_s1 = inlined_call_operand.vmem [shape: bf16[2,16], index: 1, kind: input, shape index: {}]   ;;  %s580_s2 = inlined_call_operand.vmem [shape: bf16[16,2], index: 2, kind: input, shape index: {}]   ;;  %s581_s3 = inlined_call_operand.vmem [shape: bf16[16,32], index: 3, kind: input, shape index: {}]   ;;  %s582_s4 = inlined_call_operand.vmem [shape: f32[1,32], index: 4, kind: input, shape index: {}]   ;;  %s583_s5 = inlined_call_operand.vmem [shape: f32[1,32], index: 5, kind: input, shape index: {}]   ;;  %s584_s6 = inlined_call_operand.<no memory space> [shape: f32[1,1], index: 6, kind: input, shape index: {}]   ;;  %s585_s7 = inlined_call_operand.vmem [shape: f32[16,1], index: 7, kind: output, shape index: {}]  }
   0x1   :  { %v12_v0 = vstv %s584_s6 }
   0x2   :  { %13 = vst [vmem:[#allocation2] sm:$0x1] %v12_v0 }
   0x3   :  { %14 = vsyncpa [#allocation4], 0  ;;  %s473_s26 = smov [#allocation3]   ;;  %s449_s30 = scalar_lea.hbm %s578_s0, 256 }
   0x4   :  { %s20_s27 = sshll.u32 %s473_s26, 4  ;;  %p450_p0 = scmp.ne.s32.totalorder %s578_s0, %s449_s30  ;;  %s21_s27 = int_to_ptr.vmem [resolvable:$true] %s20_s27 }
   0x5   :  { %p453_p1 = scmp.lt.u32.totalorder %s449_s30, %s578_s0 }
   0x7   :  { %p455_p2 = pnand %p453_p1, %p450_p0 }
   0x9   :  { %458 = shalt.err (!%p455_p2)
}
   0xa   :  { %s459_s6 = scalar_lea.vmem %s21_s27, 256  ;;  %p464_p4 = scmp.lt.s32.totalorder %s21_s27, %s21_s27 }
   0xb   :  { %p460_p3 = scmp.ne.s32.totalorder %s21_s27, %s459_s6  ;;  %p465_p5 = scmp.lt.s32.totalorder %s459_s6, %s459_s6 }
   0xd   :  { %p466_p6 = por %p465_p5, %p464_p4 }
   0xf   :  { %p467_p7 = pnand %p466_p6, %p460_p3 }
  0x11   :  { %470 = shalt.err (!%p467_p7)
}
  0x12   :  { %s474_s12 = smov 128   ;;  %s475_s13 = smov 8  }
  0x13   :  { %26 = dma.hbm_to_vmem [thread:$0]  %s578_s0, 256, %s21_s27, [#allocation4], %s474_s12, %s474_s12, %s475_s13  }
  0x14   :  { %471 = dma.done.wait [#allocation4], 256  }
  0x15   :  { %472 = vsyncadd [#allocation4], 4294967040  ;;  %v476_v1 = vmov 0.0   ;;  %vm477_vm0 = vmmov 0   ;;  %v435_v2 = vld [vmem:[%s581_s3] sm:$0xff]   ;;  %v44_v4 = vld [vmem:[#allocation3 + $0x8] sm:$0xff] }
  0x16   :  { %392 = vmatprep.subr.bf16.mxu0 %v476_v1  ;;  %394 = vmatprep.mubr.msk.bf16.mxu0 %vm477_vm0, %v476_v1  ;;  %v43_v3 = vld [vmem:[#allocation3] sm:$0xff]  ;;  %vm47_vm1 = vcmask 130048   ;;  %v46_v8 = vand.u32 2147483647, %v44_v4  ;;  %v372_v10 = vld [vmem:[%s582_s4] ss:$0 sm:$0xff] }
  0x17   :  { %398 = vmatprep.subr.bf16.mxu1 %v476_v1  ;;  %400 = vmatprep.mubr.msk.bf16.mxu1 %vm477_vm0, %v476_v1  ;;  %v56_v5 = vpack.c.bf16 %v44_v4, %v43_v3  ;;  %v45_v6 = vand.u32 2147483647, %v43_v3  ;;  %v375_v17 = vld [vmem:[%s583_s5] ss:$0 sm:$0xff]  ;;  %vm127_vm2 = vcmask 261120   ;;  %vm145_vm5 = vcmask 7168  }
  0x18   :  { %393 = vmatpush3.bf16.msra.mxu0 %v435_v2  ;;  %v51_v9 = vsel %vm47_vm1, %v46_v8, 0.0  ;;  %v376_v25 = vld [vmem:[#allocation2] ss:$0 sm:$0xff]  ;;  %vm266_vm6 = vcmask 1040384   ;;  %vm262_vm7 = vcmask 15360  }
  0x19   :  { %410 = vmatprep.subr.bf16.mxu0 %v476_v1  ;;  %v48_v7 = vsel %vm47_vm1, %v45_v6, 0.0  ;;  %v167_v54 = vld [vmem:[%s579_s1] sm:$0x1] }
  0x1a   :  { %49 = vadd.xlane.f32.xlu1 %v48_v7  ;;  %v436_v0 = vld [vmem:[%s580_s2] sm:$0xff]  }
  0x1b   :  { %395 = vmatmul.mubr.msk.bf16.vlgmr.msra.gmra.mrb[0].mxu0 %vm47_vm1, %v56_v5 }
  0x1c   :  { %412 = vmatprep.mubr.msk.bf16.mxu0 %vm477_vm0, %v476_v1 }
  0x1e   :  { %52 = vadd.xlane.f32.xlu1 %v51_v9 }
  0xa7   :  { %v50_v24 = vpop.xlane.xlu1 %49 }
  0xa8   :  { %vm54_vm3 = vcmp.gt.f32.partialorder %v50_v24, 0.0 }
  0xab   :  { %v53_v28 = vpop.xlane.xlu1 %52 }
  0xac   :  { %vm55_vm4 = vcmp.gt.f32.partialorder %v53_v28, 0.0 }
  0xee   :  { %v109_v11 = vpop.f32.mrb[0].mxu0 }
  0xef   :  { %v110_v12 = vadd.f32 %v372_v10, %v109_v11  ;;  %v396_v13 = vpop.f32.mrb[1].mxu0 }
  0xf0   :  { %v112_v14 = vpop.f32.mrb[2].mxu0 }
  0xf1   :  { %437 = vtanh.f32 %v110_v12  ;;  %v113_v15 = vadd.f32 %v372_v10, %v112_v14  ;;  %v397_v16 = vpop.f32.mrb[3].mxu0 }
  0xf3   :  { %439 = vtanh.f32 %v113_v15 }
  0xfb   :  { %v438_v18 = vpop.eup %437 }
  0xfc   :  { %v125_v19 = vmul.f32 %v438_v18, %v375_v17 }
  0xfd   :  { %v440_v20 = vpop.eup %439 }
  0xfe   :  { %v128_v21 = vsel %vm127_vm2, %v125_v19, 0.0  ;;  %v126_v22 = vmul.f32 %v440_v20, %v375_v17 }
  0xff   :  { %129 = vadd.xlane.f32.xlu0 %v128_v21 }
 0x100   :  { %v131_v23 = vsel %vm127_vm2, %v126_v22, 0.0 }
 0x103   :  { %132 = vadd.xlane.f32.xlu0 %v131_v23 }
 0x18c   :  { %v130_v26 = vpop.xlane.xlu0 %129 }
 0x18d   :  { %v141_v27 = vadd.f32 %v376_v25, %v130_v26 }
 0x18f   :  { %v143_v30 = vsel %vm54_vm3, %v141_v27, -1e+10 }
 0x190   :  { %v133_v29 = vpop.xlane.xlu0 %132  ;;  %v146_v33 = vsel %vm145_vm5, %v143_v30, -inf }
 0x191   :  { %v142_v31 = vadd.f32 %v376_v25, %v133_v29 }
 0x193   :  { %v144_v32 = vsel %vm55_vm4, %v142_v31, -1e+10 }
 0x194   :  { %v147_v34 = vsel %vm145_vm5, %v144_v32, -inf }
 0x195   :  { %v148_v35 = vmax.f32 %v146_v33, %v147_v34 }
 0x197   :  { %v149_v36 = vrot.slane %v148_v35, 4 }
 0x199   :  { %v150_v37 = vmax.f32 %v148_v35, %v149_v36 }
 0x19b   :  { %v151_v38 = vrot.slane %v150_v37, 2 }
 0x19d   :  { %v152_v39 = vmax.f32 %v150_v37, %v151_v38 }
 0x19f   :  { %v153_v40 = vrot.slane %v152_v39, 1 }
 0x1a1   :  { %v154_v41 = vmax.f32 %v152_v39, %v153_v40 }
 0x1a3   :  { %v155_v42 = vsub.f32 %v143_v30, %v154_v41  ;;  %v156_v43 = vsub.f32 %v144_v32, %v154_v41 }
 0x1a5   :  { %v157_v44 = vmul.f32 1.442695, %v155_v42  ;;  %v159_v45 = vmul.f32 1.442695, %v156_v43 }
 0x1a7   :  { %441 = vpow2.f32 %v157_v44 }
 0x1a8   :  { %443 = vpow2.f32 %v159_v45 }
 0x1b1   :  { %v442_v46 = vpop.eup %441 }
 0x1b2   :  { %v444_v47 = vpop.eup %443 }
 0x1b3   :  { %v161_v48 = vpack.c.bf16 %v444_v47, %v442_v46 }
 0x1b5   :  { %v162_v49 = vunpack.c.l.bf16 %v161_v48  ;;  %v163_v50 = vunpack.c.h.bf16 %v161_v48 }
 0x1b7   :  { %v164_v51 = vsub.f32 %v442_v46, %v162_v49  ;;  %v165_v52 = vsub.f32 %v444_v47, %v163_v50 }
 0x1b9   :  { %v166_v53 = vpack.c.bf16 %v165_v52, %v164_v51 }
 0x1bb   :  { %399 = vmatpush3.bf16.msra.mxu1 %v166_v53 }
 0x1bc   :  { %404 = vmatprep.subr.bf16.mxu1 %v476_v1 }
 0x1be   :  { %401 = vmatmul.mubr.msk.bf16.vlgmr.msra.gmra.mrb[0].mxu1 %vm47_vm1, %v167_v54 }
 0x1bf   :  { %405 = vmatpush3.bf16.msra.mxu1 %v161_v48  ;;  %406 = vmatprep.mubr.msk.bf16.mxu1 %vm477_vm0, %v476_v1 }
 0x1ca   :  { %407 = vmatmul.mubr.msk.bf16.vlgmr.msra.gmra.mrb[0].mxu1 %vm47_vm1, %v167_v54 }
 0x29d   :  { %v245_v55 = vpop.f32.mrb[0].mxu1 }
 0x29e   :  { %v251_v56 = vpack.c.bf16 %v245_v55, %v245_v55  ;;  %v408_v57 = vpop.f32.mrb[1].mxu1 }
 0x29f   :  { %v248_v58 = vpop.f32.mrb[2].mxu1 }
 0x2a0   :  { %v252_v59 = vunpack.c.l.bf16 %v251_v56  ;;  %v409_v60 = vpop.f32.mrb[3].mxu1  ;;  %v312_v2 = vsel %vm266_vm6, %v251_v56, 0 }
 0x2a2   :  { %v253_v61 = vsub.f32 %v245_v55, %v252_v59 }
 0x2a4   :  { %v254_v62 = vpack.c.bf16 %v253_v61, %v253_v61 }
 0x2a6   :  { %v268_v63 = vsel %vm266_vm6, %v254_v62, 0 }
 0x2a7   :  { %411 = vmatpush3.bf16.msra.mxu0 %v268_v63 }
 0x2a8   :  { %416 = vmatprep.subr.bf16.mxu0 %v476_v1 }
 0x2aa   :  { %413 = vmatmul.mubr.msk.bf16.vlgmr.msra.gmra.mrb[4].mxu0 %vm262_vm7, %v436_v0 }
 0x2ab   :  { %417 = vmatpush3.bf16.msra.mxu0 %v312_v2  ;;  %418 = vmatprep.mubr.msk.bf16.mxu0 %vm477_vm0, %v476_v1 }
 0x2b6   :  { %419 = vmatmul.mubr.msk.bf16.vlgmr.msra.gmra.mrb[4].mxu0 %vm262_vm7, %v436_v0 }
 0x389   :  { %v348_v3 = vpop.f32.mrb[4].mxu0 }
 0x38a   :  { %vm355_vm8 = vcmp.le.f32.partialorder %v348_v3, 0.0  ;;  %v420_v4 = vpop.f32.mrb[5].mxu0 }
 0x38b   :  { %v359_v5 = vsel %vm355_vm8, 8.0, %v348_v3  ;;  %v351_v6 = vpop.f32.mrb[6].mxu0  ;;  %v357_v10 = vsel %vm355_vm8, 1.0, %v442_v46 }
 0x38c   :  { %445 = vrcp.f32 %v359_v5  ;;  %vm356_vm9 = vcmp.le.f32.partialorder %v351_v6, 0.0  ;;  %v421_v7 = vpop.f32.mrb[7].mxu0 }
 0x38d   :  { %v360_v8 = vsel %vm356_vm9, 8.0, %v351_v6  ;;  %v358_v13 = vsel %vm356_vm9, 1.0, %v444_v47 }
 0x38e   :  { %447 = vrcp.f32 %v360_v8 }
 0x396   :  { %v446_v9 = vpop.eup %445 }
 0x397   :  { %v362_v11 = vmul.f32 %v446_v9, %v357_v10 }
 0x398   :  { %v448_v12 = vpop.eup %447 }
 0x399   :  { %365 = vst.msk [vmem:[%s585_s7] sm:$0xff] %vm145_vm5, %v362_v11  ;;  %v364_v1 = vmul.f32 %v448_v12, %v358_v13 }
 0x39b   :  { %366 = vst.msk [vmem:[%s585_s7 + $0x8] sm:$0xff] %vm145_vm5, %v364_v1 }
 0x39c   :  { %371 = vsyncpa [#allocation4], 1 }

</bundles_post_ra>
